<compile_context>
chip_gen: v7x
topology: tpu7x:2x2x1
jax: 0.10.0
libtpu: 0.0.40
codegen_flags: <defaults>
</compile_context>

<pallas_src>
import jax
import jax.numpy as jnp
from jax.experimental import pallas as pl
from jax.experimental.pallas import tpu as pltpu

NEURON = 64        # hidden width of the 5 "conv" (really Linear) layers
FC_HID = 32        # fc1 width
NUM_FEATURES = 16  # synthetic stand-in for dataset.num_features


def _round_up(a, b):
    return (a + b - 1) // b * b


def mlpnet_pool_kernel(x_ref,
                       w1_ref, b1_ref, w2_ref, b2_ref, w3_ref, b3_ref,
                       w4_ref, b4_ref, w5_ref, b5_ref,
                       pool_ref,
                       part_ref):
    """Grid = (nsplit, node_tiles_per_split).

    Per node tile: 5x (Linear + ReLU) in bf16 on the MXU (f32 accumulation),
    then accumulate this tile's global_add_pool contribution into the split's
    resident (1, G, NEURON) output block.
    """
    @pl.when(pl.program_id(1) == 0)
    def _init():
        part_ref[...] = jnp.zeros_like(part_ref)

    h = x_ref[...]                                            # (tile_n, F) bf16
    for w_ref, b_ref in ((w1_ref, b1_ref), (w2_ref, b2_ref), (w3_ref, b3_ref),
                         (w4_ref, b4_ref), (w5_ref, b5_ref)):
        z = jnp.dot(h, w_ref[...], preferred_element_type=jnp.float32) + b_ref[...]
        h = jnp.maximum(z, 0.0).astype(jnp.bfloat16)          # relu in f32, MXU in bf16

    # global_add_pool contribution: (G, tile_n) @ (tile_n, NEURON).
    # pool is pre-transposed in the wrapper (tile_n along lanes) -> no XLU
    # transpose; zero columns for padded nodes contribute nothing.
    part_ref[...] += jnp.dot(pool_ref[...], h,
                             preferred_element_type=jnp.float32)[None, :, :]


def mlpnet_fc_kernel(part_ref, fw1_ref, fb1_ref, fw2_ref, fb2_ref, out_ref):
    """Tiny f32 epilogue: reduce per-split partial sums, fc1 + ReLU, fc2."""
    pooled = jnp.sum(part_ref[...], axis=0)                   # (G, NEURON) f32
    h1 = jnp.maximum(
        jnp.dot(pooled, fw1_ref[...], preferred_element_type=jnp.float32)
        + fb1_ref[...], 0.0)
    out_ref[...] = (
        jnp.dot(h1, fw2_ref[...], preferred_element_type=jnp.float32)
        + fb2_ref[...])


def mlpnet_forward(x, batch, params, num_graphs, *, tile_n=1024, nsplit=2):
    N, F = x.shape

    # Effective node tile: multiple of 128, no larger than (padded) N requires.
    tile = min(_round_up(tile_n, 128), max(128, _round_up(N, 128)))
    # Per-core split of the node axis (partial pooled sums); collapse when tiny.
    nsplit = max(1, min(nsplit, pl.cdiv(N, tile)))
    n_pad = _round_up(N, tile * nsplit)
    tiles_per_split = n_pad // (tile * nsplit)

    (w1, b1), (w2, b2), (w3, b3), (w4, b4), (w5, b5) = params["mlp"]
    fw1, fb1 = params["fc1"]
    fw2, fb2 = params["fc2"]

    # bf16 activations / conv weights / pool; biases & accumulation stay f32.
    x_pad = jnp.pad(x, ((0, n_pad - N), (0, 0))).astype(jnp.bfloat16)
    pool_t = jax.nn.one_hot(batch, num_graphs, dtype=jnp.float32).T      # (G, N)
    pool_t = jnp.pad(pool_t, ((0, 0), (0, n_pad - N))).astype(jnp.bfloat16)
    conv_w = [w.astype(jnp.bfloat16) for w in (w1, w2, w3, w4, w5)]
    conv_b = [b1, b2, b3, b4, b5]

    def wspec(arr):                      # whole-array resident operand
        return pl.BlockSpec(arr.shape, lambda s, t: (0, 0))

    in_specs = [pl.BlockSpec((tile, F),
                             lambda s, t: (s * tiles_per_split + t, 0))]
    for w, b in zip(conv_w, conv_b):
        in_specs += [wspec(w), wspec(b)]
    in_specs.append(pl.BlockSpec((num_graphs, tile),
                                 lambda s, t: (0, s * tiles_per_split + t)))

    partial = pl.pallas_call(
        mlpnet_pool_kernel,
        out_shape=jax.ShapeDtypeStruct((nsplit, num_graphs, NEURON), jnp.float32),
        grid=(nsplit, tiles_per_split),
        in_specs=in_specs,
        out_specs=pl.BlockSpec((1, num_graphs, NEURON), lambda s, t: (s, 0, 0)),
        compiler_params=pltpu.CompilerParams(
            dimension_semantics=("parallel", "arbitrary")),
    )(x_pad,
      conv_w[0], conv_b[0], conv_w[1], conv_b[1], conv_w[2], conv_b[2],
      conv_w[3], conv_b[3], conv_w[4], conv_b[4],
      pool_t)

    def full1(arr):
        return pl.BlockSpec(arr.shape, lambda i: (0,) * arr.ndim)

    out = pl.pallas_call(
        mlpnet_fc_kernel,
        out_shape=jax.ShapeDtypeStruct((num_graphs, 1), jnp.float32),
        grid=(1,),
        in_specs=[full1(partial), full1(fw1), full1(fb1), full1(fw2), full1(fb2)],
        out_specs=pl.BlockSpec((num_graphs, 1), lambda i: (0, 0)),
    )(partial, fw1, fb1, fw2, fb2)

    return out


def init_params(key, num_features):
    """Deterministic synthetic weights with the same shapes as MlpNet.__init__."""
    dims = [(num_features, NEURON), (NEURON, NEURON), (NEURON, NEURON),
            (NEURON, NEURON), (NEURON, NEURON)]
    keys = jax.random.split(key, len(dims) + 2)
    mlp = []
    for k, (din, dout) in zip(keys[:len(dims)], dims):
        kw, kb = jax.random.split(k)
        w = jax.random.normal(kw, (din, dout), jnp.float32) * (1.0 / jnp.sqrt(din))
        b = jax.random.normal(kb, (1, dout), jnp.float32) * 0.01
        mlp.append((w, b))
    kw, kb = jax.random.split(keys[-2])
    fc1 = (jax.random.normal(kw, (NEURON, FC_HID), jnp.float32) * (1.0 / jnp.sqrt(NEURON)),
           jax.random.normal(kb, (1, FC_HID), jnp.float32) * 0.01)
    kw, kb = jax.random.split(keys[-1])
    fc2 = (jax.random.normal(kw, (FC_HID, 1), jnp.float32) * (1.0 / jnp.sqrt(FC_HID)),
           jax.random.normal(kb, (1, 1), jnp.float32) * 0.01)
    return {"mlp": mlp, "fc1": fc1, "fc2": fc2}


def reference_forward(x, batch, params, num_graphs):
    """Pure-JAX f32 reference matching the PyTorch forward semantics."""
    h = x
    for w, b in params["mlp"]:
        h = jax.nn.relu(h @ w + b)
    pooled = jax.ops.segment_sum(h, batch, num_segments=num_graphs)  # global_add_pool
    fw1, fb1 = params["fc1"]
    fw2, fb2 = params["fc2"]
    h1 = jax.nn.relu(pooled @ fw1 + fb1)
    return h1 @ fw2 + fb2


def reference_forward_bf16(x, batch, params, num_graphs):
    """Reference that mirrors the kernel's bf16/f32 mixed-precision scheme."""
    h = x.astype(jnp.bfloat16)
    for w, b in params["mlp"]:
        z = jnp.dot(h, w.astype(jnp.bfloat16),
                    preferred_element_type=jnp.float32) + b
        h = jax.nn.relu(z).astype(jnp.bfloat16)
    pooled = jax.ops.segment_sum(h.astype(jnp.float32), batch,
                                 num_segments=num_graphs)
    fw1, fb1 = params["fc1"]
    fw2, fb2 = params["fc2"]
    h1 = jax.nn.relu(pooled @ fw1 + fb1)
    return h1 @ fw2 + fb2


if __name__ == "__main__":
    key = jax.random.PRNGKey(0)
    k_x, k_p = jax.random.split(key)

    num_graphs = 2
    num_nodes = 32  # 16 nodes per graph (padded internally to a 128-wide tile)
    x = jax.random.normal(k_x, (num_nodes, NUM_FEATURES), jnp.float32)
    batch = jnp.concatenate(
        [jnp.zeros((16,), jnp.int32), jnp.ones((16,), jnp.int32)])

    params = init_params(k_p, NUM_FEATURES)

    out = mlpnet_forward(x, batch, params, num_graphs)
    out = jax.block_until_ready(out)
    assert out.shape == (num_graphs, 1)

    # Tight check vs a reference with the same bf16/f32 mixed precision.
    ref_bf16 = reference_forward_bf16(x, batch, params, num_graphs)
    assert jnp.allclose(out, ref_bf16, atol=5e-2, rtol=5e-2), (out, ref_bf16)

    # Loose check vs the full-f32 PyTorch-semantics reference (bf16 MXU path).
    ref_f32 = reference_forward(x, batch, params, num_graphs)
    assert jnp.allclose(out, ref_f32, atol=2.5e-1, rtol=1e-1), (out, ref_f32)

    print("KERNEL_OK")
</pallas_src>

<mosaic_0001>
module attributes {stable_mosaic.version = 11 : i64} {
  func.func @mlpnet_pool_kernel(%arg0: i32, %arg1: i32, %arg2: memref<128x16xbf16, #tpu.memory_space<vmem>>, %arg3: memref<16x64xbf16, #tpu.memory_space<vmem>>, %arg4: memref<1x64xf32, #tpu.memory_space<vmem>>, %arg5: memref<64x64xbf16, #tpu.memory_space<vmem>>, %arg6: memref<1x64xf32, #tpu.memory_space<vmem>>, %arg7: memref<64x64xbf16, #tpu.memory_space<vmem>>, %arg8: memref<1x64xf32, #tpu.memory_space<vmem>>, %arg9: memref<64x64xbf16, #tpu.memory_space<vmem>>, %arg10: memref<1x64xf32, #tpu.memory_space<vmem>>, %arg11: memref<64x64xbf16, #tpu.memory_space<vmem>>, %arg12: memref<1x64xf32, #tpu.memory_space<vmem>>, %arg13: memref<2x128xbf16, #tpu.memory_space<vmem>>, %arg14: memref<1x2x64xf32, #tpu.memory_space<vmem>>) attributes {dimension_semantics = [#tpu.dimension_semantics<parallel>, #tpu.dimension_semantics<arbitrary>], iteration_bounds = array<i64: 1, 1>, scalar_prefetch = 0 : i64, scratch_operands = 0 : i64, tpu.core_type = #tpu.core_type<tc>, window_params = [{transform_indices = @transform_0, window_bounds = array<i64: 128, 16>}, {pipeline_mode = #tpu.pipeline_mode<synchronous>, transform_indices = @transform_1, window_bounds = array<i64: 16, 64>}, {pipeline_mode = #tpu.pipeline_mode<synchronous>, transform_indices = @transform_2, window_bounds = array<i64: 1, 64>}, {pipeline_mode = #tpu.pipeline_mode<synchronous>, transform_indices = @transform_3, window_bounds = array<i64: 64, 64>}, {pipeline_mode = #tpu.pipeline_mode<synchronous>, transform_indices = @transform_4, window_bounds = array<i64: 1, 64>}, {pipeline_mode = #tpu.pipeline_mode<synchronous>, transform_indices = @transform_5, window_bounds = array<i64: 64, 64>}, {pipeline_mode = #tpu.pipeline_mode<synchronous>, transform_indices = @transform_6, window_bounds = array<i64: 1, 64>}, {pipeline_mode = #tpu.pipeline_mode<synchronous>, transform_indices = @transform_7, window_bounds = array<i64: 64, 64>}, {pipeline_mode = #tpu.pipeline_mode<synchronous>, transform_indices = @transform_8, window_bounds = array<i64: 1, 64>}, {pipeline_mode = #tpu.pipeline_mode<synchronous>, transform_indices = @transform_9, window_bounds = array<i64: 64, 64>}, {pipeline_mode = #tpu.pipeline_mode<synchronous>, transform_indices = @transform_10, window_bounds = array<i64: 1, 64>}, {transform_indices = @transform_11, window_bounds = array<i64: 2, 128>}, {transform_indices = @transform_12, window_bounds = array<i64: 1, 2, 64>}]} {
    %c0_i32 = arith.constant 0 : i32
    %0 = arith.cmpi eq, %arg1, %c0_i32 : i32
    %1 = arith.extui %0 : i1 to i32
    %c0_i32_0 = arith.constant 0 : i32
    %2 = arith.cmpi ne, %1, %c0_i32_0 : i32
    scf.if %2 {
      %cst_40 = arith.constant 0.000000e+00 : f32
      %50 = vector.broadcast %cst_40 : f32 to vector<1x2x64xf32>
      %c0_41 = arith.constant 0 : index
      %c0_42 = arith.constant 0 : index
      %c0_43 = arith.constant 0 : index
      %51 = vector.load %arg14[%c0_41, %c0_42, %c0_43] : memref<1x2x64xf32, #tpu.memory_space<vmem>>, vector<1x2x64xf32>
      tpu.vector_store %arg14[%c0_41, %c0_42, %c0_43], %50 {strides = array<i32>} : memref<1x2x64xf32, #tpu.memory_space<vmem>>, vector<1x2x64xf32>,
    } else {
    }
    %c0 = arith.constant 0 : index
    %c0_1 = arith.constant 0 : index
    %3 = vector.load %arg2[%c0, %c0_1] : memref<128x16xbf16, #tpu.memory_space<vmem>>, vector<128x16xbf16>
    %c0_2 = arith.constant 0 : index
    %c0_3 = arith.constant 0 : index
    %4 = vector.load %arg3[%c0_2, %c0_3] : memref<16x64xbf16, #tpu.memory_space<vmem>>, vector<16x64xbf16>
    %cst = arith.constant dense<0.000000e+00> : vector<128x64xf32>
    %5 = tpu.matmul %3, %4, %cst {dimension_numbers = #tpu.dot_dimension_numbers<[1], [0], [0], [1], [0, 0, 1, 1], [], []>} : vector<128x16xbf16>, vector<16x64xbf16>, vector<128x64xf32> -> vector<128x64xf32>
    %c0_4 = arith.constant 0 : index
    %c0_5 = arith.constant 0 : index
    %6 = vector.load %arg4[%c0_4, %c0_5] : memref<1x64xf32, #tpu.memory_space<vmem>>, vector<1x64xf32>
    %7 = vector.broadcast %6 : vector<1x64xf32> to vector<128x64xf32>
    %8 = arith.addf %5, %7 : vector<128x64xf32>
    %cst_6 = arith.constant 0.000000e+00 : f32
    %9 = vector.broadcast %cst_6 : f32 to vector<128x64xf32>
    %10 = arith.maximumf %8, %9 : vector<128x64xf32>
    %11 = arith.truncf %10 : vector<128x64xf32> to vector<128x64xbf16>
    %c0_7 = arith.constant 0 : index
    %c0_8 = arith.constant 0 : index
    %12 = vector.load %arg5[%c0_7, %c0_8] : memref<64x64xbf16, #tpu.memory_space<vmem>>, vector<64x64xbf16>
    %cst_9 = arith.constant dense<0.000000e+00> : vector<128x64xf32>
    %13 = tpu.matmul %11, %12, %cst_9 {dimension_numbers = #tpu.dot_dimension_numbers<[1], [0], [0], [1], [0, 0, 1, 1], [], []>} : vector<128x64xbf16>, vector<64x64xbf16>, vector<128x64xf32> -> vector<128x64xf32>
    %c0_10 = arith.constant 0 : index
    %c0_11 = arith.constant 0 : index
    %14 = vector.load %arg6[%c0_10, %c0_11] : memref<1x64xf32, #tpu.memory_space<vmem>>, vector<1x64xf32>
    %15 = vector.broadcast %14 : vector<1x64xf32> to vector<128x64xf32>
    %16 = arith.addf %13, %15 : vector<128x64xf32>
    %cst_12 = arith.constant 0.000000e+00 : f32
    %17 = vector.broadcast %cst_12 : f32 to vector<128x64xf32>
    %18 = arith.maximumf %16, %17 : vector<128x64xf32>
    %19 = arith.truncf %18 : vector<128x64xf32> to vector<128x64xbf16>
    %c0_13 = arith.constant 0 : index
    %c0_14 = arith.constant 0 : index
    %20 = vector.load %arg7[%c0_13, %c0_14] : memref<64x64xbf16, #tpu.memory_space<vmem>>, vector<64x64xbf16>
    %cst_15 = arith.constant dense<0.000000e+00> : vector<128x64xf32>
    %21 = tpu.matmul %19, %20, %cst_15 {dimension_numbers = #tpu.dot_dimension_numbers<[1], [0], [0], [1], [0, 0, 1, 1], [], []>} : vector<128x64xbf16>, vector<64x64xbf16>, vector<128x64xf32> -> vector<128x64xf32>
    %c0_16 = arith.constant 0 : index
    %c0_17 = arith.constant 0 : index
    %22 = vector.load %arg8[%c0_16, %c0_17] : memref<1x64xf32, #tpu.memory_space<vmem>>, vector<1x64xf32>
    %23 = vector.broadcast %22 : vector<1x64xf32> to vector<128x64xf32>
    %24 = arith.addf %21, %23 : vector<128x64xf32>
    %cst_18 = arith.constant 0.000000e+00 : f32
    %25 = vector.broadcast %cst_18 : f32 to vector<128x64xf32>
    %26 = arith.maximumf %24, %25 : vector<128x64xf32>
    %27 = arith.truncf %26 : vector<128x64xf32> to vector<128x64xbf16>
    %c0_19 = arith.constant 0 : index
    %c0_20 = arith.constant 0 : index
    %28 = vector.load %arg9[%c0_19, %c0_20] : memref<64x64xbf16, #tpu.memory_space<vmem>>, vector<64x64xbf16>
    %cst_21 = arith.constant dense<0.000000e+00> : vector<128x64xf32>
    %29 = tpu.matmul %27, %28, %cst_21 {dimension_numbers = #tpu.dot_dimension_numbers<[1], [0], [0], [1], [0, 0, 1, 1], [], []>} : vector<128x64xbf16>, vector<64x64xbf16>, vector<128x64xf32> -> vector<128x64xf32>
    %c0_22 = arith.constant 0 : index
    %c0_23 = arith.constant 0 : index
    %30 = vector.load %arg10[%c0_22, %c0_23] : memref<1x64xf32, #tpu.memory_space<vmem>>, vector<1x64xf32>
    %31 = vector.broadcast %30 : vector<1x64xf32> to vector<128x64xf32>
    %32 = arith.addf %29, %31 : vector<128x64xf32>
    %cst_24 = arith.constant 0.000000e+00 : f32
    %33 = vector.broadcast %cst_24 : f32 to vector<128x64xf32>
    %34 = arith.maximumf %32, %33 : vector<128x64xf32>
    %35 = arith.truncf %34 : vector<128x64xf32> to vector<128x64xbf16>
    %c0_25 = arith.constant 0 : index
    %c0_26 = arith.constant 0 : index
    %36 = vector.load %arg11[%c0_25, %c0_26] : memref<64x64xbf16, #tpu.memory_space<vmem>>, vector<64x64xbf16>
    %cst_27 = arith.constant dense<0.000000e+00> : vector<128x64xf32>
    %37 = tpu.matmul %35, %36, %cst_27 {dimension_numbers = #tpu.dot_dimension_numbers<[1], [0], [0], [1], [0, 0, 1, 1], [], []>} : vector<128x64xbf16>, vector<64x64xbf16>, vector<128x64xf32> -> vector<128x64xf32>
    %c0_28 = arith.constant 0 : index
    %c0_29 = arith.constant 0 : index
    %38 = vector.load %arg12[%c0_28, %c0_29] : memref<1x64xf32, #tpu.memory_space<vmem>>, vector<1x64xf32>
    %39 = vector.broadcast %38 : vector<1x64xf32> to vector<128x64xf32>
    %40 = arith.addf %37, %39 : vector<128x64xf32>
    %cst_30 = arith.constant 0.000000e+00 : f32
    %41 = vector.broadcast %cst_30 : f32 to vector<128x64xf32>
    %42 = arith.maximumf %40, %41 : vector<128x64xf32>
    %43 = arith.truncf %42 : vector<128x64xf32> to vector<128x64xbf16>
    %c0_31 = arith.constant 0 : index
    %c0_32 = arith.constant 0 : index
    %c0_33 = arith.constant 0 : index
    %44 = vector.load %arg14[%c0_31, %c0_32, %c0_33] : memref<1x2x64xf32, #tpu.memory_space<vmem>>, vector<1x2x64xf32>
    %c0_34 = arith.constant 0 : index
    %c0_35 = arith.constant 0 : index
    %45 = vector.load %arg13[%c0_34, %c0_35] : memref<2x128xbf16, #tpu.memory_space<vmem>>, vector<2x128xbf16>
    %cst_36 = arith.constant dense<0.000000e+00> : vector<2x64xf32>
    %46 = tpu.matmul %45, %43, %cst_36 {dimension_numbers = #tpu.dot_dimension_numbers<[1], [0], [0], [1], [0, 0, 1, 1], [], []>} : vector<2x128xbf16>, vector<128x64xbf16>, vector<2x64xf32> -> vector<2x64xf32>
    %47 = vector.shape_cast %46 : vector<2x64xf32> to vector<1x2x64xf32>
    %48 = arith.addf %44, %47 : vector<1x2x64xf32>
    %c0_37 = arith.constant 0 : index
    %c0_38 = arith.constant 0 : index
    %c0_39 = arith.constant 0 : index
    %49 = vector.load %arg14[%c0_37, %c0_38, %c0_39] : memref<1x2x64xf32, #tpu.memory_space<vmem>>, vector<1x2x64xf32>
    tpu.vector_store %arg14[%c0_37, %c0_38, %c0_39], %48 {strides = array<i32>} : memref<1x2x64xf32, #tpu.memory_space<vmem>>, vector<1x2x64xf32>,
    return
  }
  func.func @transform_0(%arg0: i32, %arg1: i32) -> (i32, i32) {
    %c1_i32 = arith.constant 1 : i32
    %0 = arith.muli %arg0, %c1_i32 : i32
    %1 = arith.addi %0, %arg1 : i32
    %c0_i32 = arith.constant 0 : i32
    %c0_i32_0 = arith.constant 0 : i32
    return %1, %c0_i32 : i32, i32
  }
  func.func @transform_1(%arg0: i32, %arg1: i32) -> (i32, i32) {
    %c0_i32 = arith.constant 0 : i32
    %c0_i32_0 = arith.constant 0 : i32
    %c0_i32_1 = arith.constant 0 : i32
    return %c0_i32, %c0_i32_0 : i32, i32
  }
  func.func @transform_2(%arg0: i32, %arg1: i32) -> (i32, i32) {
    %c0_i32 = arith.constant 0 : i32
    %c0_i32_0 = arith.constant 0 : i32
    %c0_i32_1 = arith.constant 0 : i32
    return %c0_i32, %c0_i32_0 : i32, i32
  }
  func.func @transform_3(%arg0: i32, %arg1: i32) -> (i32, i32) {
    %c0_i32 = arith.constant 0 : i32
    %c0_i32_0 = arith.constant 0 : i32
    %c0_i32_1 = arith.constant 0 : i32
    return %c0_i32, %c0_i32_0 : i32, i32
  }
  func.func @transform_4(%arg0: i32, %arg1: i32) -> (i32, i32) {
    %c0_i32 = arith.constant 0 : i32
    %c0_i32_0 = arith.constant 0 : i32
    %c0_i32_1 = arith.constant 0 : i32
    return %c0_i32, %c0_i32_0 : i32, i32
  }
  func.func @transform_5(%arg0: i32, %arg1: i32) -> (i32, i32) {
    %c0_i32 = arith.constant 0 : i32
    %c0_i32_0 = arith.constant 0 : i32
    %c0_i32_1 = arith.constant 0 : i32
    return %c0_i32, %c0_i32_0 : i32, i32
  }
  func.func @transform_6(%arg0: i32, %arg1: i32) -> (i32, i32) {
    %c0_i32 = arith.constant 0 : i32
    %c0_i32_0 = arith.constant 0 : i32
    %c0_i32_1 = arith.constant 0 : i32
    return %c0_i32, %c0_i32_0 : i32, i32
  }
  func.func @transform_7(%arg0: i32, %arg1: i32) -> (i32, i32) {
    %c0_i32 = arith.constant 0 : i32
    %c0_i32_0 = arith.constant 0 : i32
    %c0_i32_1 = arith.constant 0 : i32
    return %c0_i32, %c0_i32_0 : i32, i32
  }
  func.func @transform_8(%arg0: i32, %arg1: i32) -> (i32, i32) {
    %c0_i32 = arith.constant 0 : i32
    %c0_i32_0 = arith.constant 0 : i32
    %c0_i32_1 = arith.constant 0 : i32
    return %c0_i32, %c0_i32_0 : i32, i32
  }
  func.func @transform_9(%arg0: i32, %arg1: i32) -> (i32, i32) {
    %c0_i32 = arith.constant 0 : i32
    %c0_i32_0 = arith.constant 0 : i32
    %c0_i32_1 = arith.constant 0 : i32
    return %c0_i32, %c0_i32_0 : i32, i32
  }
  func.func @transform_10(%arg0: i32, %arg1: i32) -> (i32, i32) {
    %c0_i32 = arith.constant 0 : i32
    %c0_i32_0 = arith.constant 0 : i32
    %c0_i32_1 = arith.constant 0 : i32
    return %c0_i32, %c0_i32_0 : i32, i32
  }
  func.func @transform_11(%arg0: i32, %arg1: i32) -> (i32, i32) {
    %c1_i32 = arith.constant 1 : i32
    %0 = arith.muli %arg0, %c1_i32 : i32
    %1 = arith.addi %0, %arg1 : i32
    %c0_i32 = arith.constant 0 : i32
    %c0_i32_0 = arith.constant 0 : i32
    return %c0_i32, %1 : i32, i32
  }
  func.func @transform_12(%arg0: i32, %arg1: i32) -> (i32, i32, i32) {
    %c0_i32 = arith.constant 0 : i32
    %c0_i32_0 = arith.constant 0 : i32
    %c0_i32_1 = arith.constant 0 : i32
    return %arg0, %c0_i32, %c0_i32_0 : i32, i32, i32
  }
}

</mosaic_0001>

<bundles_post_ra>
// kernel: tpu_custom_call.1
= control target key start
LH: loop header
LB: loop body
LE: loop exit
PB: predicated region body
PF: predicated region fallthrough
CT: control target
= control target key end

     0   :  { %17 = vsyncpa [#allocation3], 0  ;;  %s1802_s0 = inlined_call_operand.vmem [shape: bf16[128,16], index: 0, kind: input, shape index: {}]   ;;  %s1803_s1 = inlined_call_operand.hbm [shape: bf16[16,64], index: 1, kind: input, shape index: {}]   ;;  %s1804_s2 = inlined_call_operand.vmem [shape: f32[1,64], index: 2, kind: input, shape index: {}]   ;;  %s1805_s3 = inlined_call_operand.vmem [shape: bf16[64,64], index: 3, kind: input, shape index: {}]   ;;  %s1806_s4 = inlined_call_operand.vmem [shape: f32[1,64], index: 4, kind: input, shape index: {}]   ;;  %s1807_s5 = inlined_call_operand.vmem [shape: bf16[64,64], index: 5, kind: input, shape index: {}]   ;;  %s1808_s6 = inlined_call_operand.hbm [shape: f32[1,64], index: 6, kind: input, shape index: {}]   ;;  %s1809_s7 = inlined_call_operand.vmem [shape: bf16[64,64], index: 7, kind: input, shape index: {}]   ;;  %s1810_s8 = inlined_call_operand.vmem [shape: f32[1,64], index: 8, kind: input, shape index: {}]   ;;  %s1811_s9 = inlined_call_operand.hbm [shape: bf16[64,64], index: 9, kind: input, shape index: {}]   ;;  %s1812_s10 = inlined_call_operand.vmem [shape: f32[1,64], index: 10, kind: input, shape index: {}]   ;;  %s1813_s11 = inlined_call_operand.vmem [shape: bf16[2,128], index: 11, kind: input, shape index: {}]   ;;  %s1814_s12 = inlined_call_operand.hbm [shape: f32[1,2,64], index: 12, kind: output, shape index: {}]  }
   0x1   :  { %18 = vsyncpa [#allocation6], 0 }
   0x2   :  { %19 = vsyncpa [#allocation4], 0  ;;  %s1547_s21 = smov [#allocation5]   ;;  %s1548_s23 = smov [#allocation2]  }
   0x3   :  { %s56_s22 = sshll.u32 %s1547_s21, 4  ;;  %s35_s24 = sshll.u32 %s1548_s23, 4  ;;  %s57_s22 = int_to_ptr.vmem [resolvable:$true] %s56_s22  ;;  %s1620_s24 = int_to_ptr.vmem [resolvable:$true] %s35_s24 }
   0x4   :  { %s1453_s27 = scalar_lea.hbm %s1808_s6, 16 }
   0x5   :  { %p1454_p0 = scmp.ne.s32.totalorder %s1808_s6, %s1453_s27  ;;  %p1457_p1 = scmp.lt.u32.totalorder %s1453_s27, %s1808_s6 }
   0x7   :  { %p1459_p2 = pnand %p1457_p1, %p1454_p0 }
   0x9   :  { %1462 = shalt.err (!%p1459_p2)
}
   0xa   :  { %s1463_s14 = scalar_lea.vmem %s57_s22, 16  ;;  %s1467_s15 = scalar_lea.vmem %s57_s22, 32 }
   0xb   :  { %p1464_p3 = scmp.ne.s32.totalorder %s57_s22, %s1463_s14  ;;  %p1468_p4 = scmp.lt.s32.totalorder %s57_s22, %s57_s22 }
   0xc   :  { %p1469_p5 = scmp.lt.s32.totalorder %s1467_s15, %s1463_s14 }
   0xe   :  { %p1470_p6 = por %p1469_p5, %p1468_p4 }
  0x10   :  { %p1471_p7 = pnand %p1470_p6, %p1464_p3 }
  0x12   :  { %1474 = shalt.err (!%p1471_p7)
}
  0x13   :  { %59 = dma.hbm_to_vmem [thread:$0]  %s1808_s6, 16, %s57_s22, [#allocation6]  }
  0x14   :  { %s1475_s20 = scalar_lea.hbm %s1803_s1, 128 }
  0x15   :  { %p1476_p8 = scmp.ne.s32.totalorder %s1803_s1, %s1475_s20  ;;  %p1479_p9 = scmp.lt.u32.totalorder %s1475_s20, %s1803_s1 }
  0x17   :  { %p1481_p10 = pnand %p1479_p9, %p1476_p8 }
  0x19   :  { %1484 = shalt.err (!%p1481_p10)
}
  0x1a   :  { %s1485_s27 = scalar_lea.vmem %s1620_s24, 128  ;;  %p1490_p12 = scmp.lt.s32.totalorder %s1620_s24, %s1620_s24 }
  0x1b   :  { %p1486_p11 = scmp.ne.s32.totalorder %s1620_s24, %s1485_s27  ;;  %p1491_p13 = scmp.lt.s32.totalorder %s1485_s27, %s1485_s27 }
  0x1d   :  { %p1492_p0 = por %p1491_p13, %p1490_p12 }
  0x1f   :  { %p1493_p1 = pnand %p1492_p0, %p1486_p11 }
  0x21   :  { %1496 = shalt.err (!%p1493_p1)
}
  0x22   :  { %s1549_s6 = smov 64   ;;  %s1550_s22 = smov 4  }
  0x23   :  { %41 = dma.hbm_to_vmem [thread:$0]  %s1803_s1, 128, %s1620_s24, [#allocation3], %s1549_s6, %s1549_s6, %s1550_s22  }
  0x24   :  { %s1551_s30 = smov [#allocation7]   ;;  %s1497_s16 = scalar_lea.hbm %s1811_s9, 512 }
  0x25   :  { %s69_s13 = sshll.u32 %s1551_s30, 4  ;;  %p1498_p2 = scmp.ne.s32.totalorder %s1811_s9, %s1497_s16  ;;  %s70_s13 = int_to_ptr.vmem [resolvable:$true] %s69_s13 }
  0x26   :  { %p1501_p3 = scmp.lt.u32.totalorder %s1497_s16, %s1811_s9 }
  0x28   :  { %p1503_p4 = pnand %p1501_p3, %p1498_p2 }
  0x2a   :  { %1506 = shalt.err (!%p1503_p4)
}
  0x2b   :  { %s1507_s21 = scalar_lea.vmem %s70_s13, 512  ;;  %p1512_p6 = scmp.lt.s32.totalorder %s70_s13, %s70_s13 }
  0x2c   :  { %p1508_p5 = scmp.ne.s32.totalorder %s70_s13, %s1507_s21  ;;  %p1513_p7 = scmp.lt.s32.totalorder %s1507_s21, %s1507_s21 }
  0x2e   :  { %p1514_p8 = por %p1513_p7, %p1512_p6 }
  0x30   :  { %p1515_p9 = pnand %p1514_p8, %p1508_p5 }
  0x32   :  { %1518 = shalt.err (!%p1515_p9)
}
  0x33   :  { %75 = dma.hbm_to_vmem [thread:$0]  %s1811_s9, 512, %s70_s13, [#allocation6], %s1549_s6, %s1549_s6, %s1550_s22  }
  0x34   :  { %1541 = dma.done.wait [#allocation3], 128  }
  0x35   :  { %1542 = vsyncadd [#allocation3], 4294967168 }
  0x36   :  { %1543 = dma.done.wait [#allocation6], 528  }
  0x37   :  { %1544 = vsyncadd [#allocation6], 4294966768  ;;  %v1428_v0 = vld [vmem:[#allocation2] sm:$0xff]   ;;  %vm195_vm0 = vcmask 130048   ;;  %v1430_v2 = vld [vmem:[%s1802_s0 + $0x8] sm:$0xff]   ;;  %vm380_vm1 = vcmask 523264  }
  0x38   :  { %v1429_v1 = vld [vmem:[%s1802_s0] sm:$0xff]   ;;  %1284 = vmatprep.subr.bf16.mxu0 %v1428_v0  ;;  %1418 = vmatprep.subr.bf16.mxu1 %v1428_v0  ;;  %v1431_v3 = vld [vmem:[%s1802_s0 + $0x10] sm:$0xff]   ;;  %v1434_v5 = vld [vmem:[%s1802_s0 + $0x28] sm:$0xff]   ;;  %vm1553_vm2 = vmmov 0   ;;  %vm122_vm3 = vcmask 517120   ;;  %s1554_s23 = smov [#allocation8]  }
  0x39   :  { %1285 = vmatpush3.bf16.msra.mxu0 %v1428_v0  ;;  %1286 = vmatprep.mubr.msk.bf16.mxu0 %vm195_vm0, %v1429_v1  ;;  %v1433_v4 = vld [vmem:[%s1802_s0 + $0x20] sm:$0xff]   ;;  %v1435_v6 = vld [vmem:[%s1802_s0 + $0x30] sm:$0xff]   ;;  %v1432_v7 = vld [vmem:[%s1802_s0 + $0x18] sm:$0xff]   ;;  %s1129_s25 = sshll.u32 %s1554_s23, 4  ;;  %s1130_s25 = int_to_ptr.vmem [resolvable:$true] %s1129_s25 }
  0x3a   :  { %1419 = vmatpush3.bf16.msra.mxu1 %v1428_v0  ;;  %1294 = vmatprep.mubr.msk.bf16.mxu1 %vm195_vm0, %v1433_v4  ;;  %v1437_v8 = vld [vmem:[%s1805_s3] sm:$0xff]   ;;  %v1436_v9 = vld [vmem:[%s1802_s0 + $0x38] sm:$0xff]   ;;  %v1438_v10 = vld [vmem:[%s1805_s3 + $0x8] sm:$0xff]   ;;  %s1519_s0 = scalar_lea.vmem %s1130_s25, 32  ;;  %p1524_p11 = scmp.lt.s32.totalorder %s1130_s25, %s1130_s25 }
  0x3b   :  { %1302 = vmatprep.subr.bf16.mxu1 %v1437_v8  ;;  %v1439_v11 = vld [vmem:[%s1805_s3 + $0x10] sm:$0xff]   ;;  %v1440_v12 = vld [vmem:[%s1805_s3 + $0x18] sm:$0xff]   ;;  %v1441_v13 = vld [vmem:[%s1807_s5] sm:$0xff]   ;;  %p1520_p10 = scmp.ne.s32.totalorder %s1130_s25, %s1519_s0  ;;  %p1525_p12 = scmp.lt.s32.totalorder %s1519_s0, %s1519_s0 }
  0x3c   :  { %1287 = vmatmul.mubr.msk.bf16.vlgmr.msra.gmra.mrb[0].mxu0 %vm195_vm0, %v1430_v2  ;;  %v1442_v14 = vld [vmem:[%s1807_s5 + $0x8] sm:$0xff]   ;;  %1326 = vmatprep.subr.bf16.mxu0 %v1441_v13  ;;  %v1148_v15 = vld [vmem:[%s1804_s2] ss:$0 sm:$0xff] }
  0x3d   :  { %1290 = vmatprep.mubr.msk.bf16.mxu0 %vm195_vm0, %v1431_v3  ;;  %1295 = vmatmul.mubr.msk.bf16.vlgmr.msra.gmra.mrb[0].mxu1 %vm195_vm0, %v1434_v5  ;;  %p1526_p13 = por %p1525_p12, %p1524_p11 }
  0x3e   :  { %1298 = vmatprep.mubr.msk.bf16.mxu1 %vm195_vm0, %v1435_v6  ;;  %1303 = vmatpush3.bf16.msra.mxu1 %v1437_v8  ;;  %v1443_v8 = vld [vmem:[%s1807_s5 + $0x10] sm:$0xff]  }
  0x3f   :  { %1304 = vmatprep.subr.bf16.mxu1 %v1438_v10  ;;  %1327 = vmatpush3.bf16.msra.mxu0 %v1441_v13  ;;  %v1166_v13 = vld [vmem:[%s1806_s4] ss:$0 sm:$0xff]  ;;  %p1527_p0 = pnand %p1526_p13, %p1520_p10 }
  0x40   :  { %1328 = vmatprep.subr.bf16.mxu0 %v1442_v14 }
  0x42   :  { %1305 = vmatpush3.bf16.msra.mxu1 %v1438_v10  ;;  %v1445_v10 = vld [vmem:[%s1809_s7] sm:$0xff]  }
  0x43   :  { %1306 = vmatprep.subr.bf16.mxu1 %v1439_v11  ;;  %1329 = vmatpush3.bf16.msra.mxu0 %v1442_v14 }
  0x44   :  { %1291 = vmatmul.mubr.msk.bf16.gmra.mrb[4].mxu0 %vm195_vm0, %v1432_v7  ;;  %1330 = vmatprep.subr.bf16.mxu0 %v1443_v8 }
  0x45   :  { %1299 = vmatmul.mubr.msk.bf16.gmra.mrb[4].mxu1 %vm195_vm0, %v1436_v9  ;;  %v1444_v9 = vld [vmem:[%s1807_s5 + $0x18] sm:$0xff]  }
  0x46   :  { %1307 = vmatpush3.bf16.msra.mxu1 %v1439_v11  ;;  %v1446_v11 = vld [vmem:[%s1809_s7 + $0x8] sm:$0xff]  }
  0x47   :  { %1308 = vmatprep.subr.bf16.mxu1 %v1440_v12  ;;  %1331 = vmatpush3.bf16.msra.mxu0 %v1443_v8  ;;  %v1450_v8 = vld [vmem:[#allocation7 + $0x8] sm:$0xff]  }
  0x48   :  { %1332 = vmatprep.subr.bf16.mxu0 %v1444_v9 }
  0x4a   :  { %1309 = vmatpush3.bf16.msra.mxu1 %v1440_v12  ;;  %v1447_v12 = vld [vmem:[%s1809_s7 + $0x10] sm:$0xff]  }
  0x4b   :  { %1333 = vmatpush3.bf16.msra.mxu0 %v1444_v9  ;;  %1350 = vmatprep.subr.bf16.mxu1 %v1445_v10  ;;  %v1451_v9 = vld [vmem:[#allocation7 + $0x10] sm:$0xff]  }
 0x10f   :  { %v1288_v16 = vpop.f32.mrb[0].mxu0 }
 0x110   :  { %v263_v17 = vadd.f32 %v1288_v16, %v1148_v15  ;;  %v254_v18 = vpop.f32.mrb[1].mxu0  ;;  %v1296_v21 = vpop.f32.mrb[0].mxu1 }
 0x111   :  { %v255_v19 = vadd.f32 %v1148_v15, %v254_v18  ;;  %v1289_v20 = vpop.f32.mrb[2].mxu0  ;;  %v295_v24 = vadd.f32 %v1296_v21, %v1148_v15  ;;  %v286_v25 = vpop.f32.mrb[1].mxu1 }
 0x112   :  { %v266_v22 = vadd.f32 %v1289_v20, %v1148_v15  ;;  %v257_v23 = vpop.f32.mrb[3].mxu0  ;;  %v287_v27 = vadd.f32 %v1148_v15, %v286_v25  ;;  %v1297_v28 = vpop.f32.mrb[2].mxu1  ;;  %v319_v29 = vmax.f32 %v263_v17, 0.0 }
 0x113   :  { %v258_v26 = vadd.f32 %v1148_v15, %v257_v23  ;;  %v327_v31 = vmax.f32 %v295_v24, 0.0  ;;  %v298_v32 = vadd.f32 %v1297_v28, %v1148_v15  ;;  %v289_v33 = vpop.f32.mrb[3].mxu1  ;;  %v317_v34 = vmax.f32 %v255_v19, 0.0 }
 0x114   :  { %v320_v30 = vmax.f32 %v266_v22, 0.0  ;;  %v325_v36 = vmax.f32 %v287_v27, 0.0  ;;  %v290_v37 = vadd.f32 %v1148_v15, %v289_v33 }
 0x115   :  { %v318_v35 = vmax.f32 %v258_v26, 0.0  ;;  %v328_v39 = vmax.f32 %v298_v32, 0.0 }
 0x116   :  { %v334_v38 = vpack.c.bf16 %v320_v30, %v319_v29  ;;  %v326_v42 = vmax.f32 %v290_v37, 0.0 }
 0x117   :  { %v333_v40 = vpack.c.bf16 %v318_v35, %v317_v34  ;;  %v1292_v41 = vpop.f32.mrb[4].mxu0  ;;  %v338_v45 = vpack.c.bf16 %v328_v39, %v327_v31 }
 0x118   :  { %v279_v43 = vadd.f32 %v1292_v41, %v1148_v15  ;;  %v270_v44 = vpop.f32.mrb[5].mxu0  ;;  %v337_v48 = vpack.c.bf16 %v326_v42, %v325_v36  ;;  %v1300_v49 = vpop.f32.mrb[4].mxu1 }
 0x119   :  { %v271_v46 = vadd.f32 %v1148_v15, %v270_v44  ;;  %v1293_v47 = vpop.f32.mrb[6].mxu0  ;;  %1310 = vmatprep.mubr.msk.bf16.mxu1 %vm380_vm1, %v333_v40  ;;  %v311_v52 = vadd.f32 %v1300_v49, %v1148_v15  ;;  %v302_v53 = vpop.f32.mrb[5].mxu1 }
 0x11a   :  { %v282_v50 = vadd.f32 %v1293_v47, %v1148_v15  ;;  %v273_v51 = vpop.f32.mrb[7].mxu0  ;;  %1311 = vmatmul.mubr.msk.bf16.vlgmr.msra.gmra.mrb[8].mxu1 %vm380_vm1, %v334_v38  ;;  %v303_v55 = vadd.f32 %v1148_v15, %v302_v53  ;;  %v1301_v56 = vpop.f32.mrb[6].mxu1  ;;  %v323_v57 = vmax.f32 %v279_v43, 0.0 }
 0x11b   :  { %v274_v54 = vadd.f32 %v1148_v15, %v273_v51  ;;  %v331_v59 = vmax.f32 %v311_v52, 0.0  ;;  %v314_v60 = vadd.f32 %v1301_v56, %v1148_v15  ;;  %v305_v61 = vpop.f32.mrb[7].mxu1  ;;  %v321_v62 = vmax.f32 %v271_v46, 0.0  ;;  %1351 = vmatpush3.bf16.msra.mxu1 %v1445_v10  ;;  %v1179_v10 = vld [vmem:[#allocation5] ss:$0 sm:$0xff] }
 0x11c   :  { %v324_v58 = vmax.f32 %v282_v50, 0.0  ;;  %v329_v0 = vmax.f32 %v303_v55, 0.0  ;;  %v306_v1 = vadd.f32 %v1148_v15, %v305_v61  ;;  %1352 = vmatprep.subr.bf16.mxu1 %v1446_v11 }
 0x11d   :  { %v322_v63 = vmax.f32 %v274_v54, 0.0  ;;  %v332_v3 = vmax.f32 %v314_v60, 0.0 }
 0x11e   :  { %v336_v2 = vpack.c.bf16 %v324_v58, %v323_v57  ;;  %v330_v5 = vmax.f32 %v306_v1, 0.0 }
 0x11f   :  { %v335_v4 = vpack.c.bf16 %v322_v63, %v321_v62  ;;  %v340_v6 = vpack.c.bf16 %v332_v3, %v331_v59  ;;  %1353 = vmatpush3.bf16.msra.mxu1 %v1446_v11 }
 0x120   :  { %v339_v7 = vpack.c.bf16 %v330_v5, %v329_v0  ;;  %1354 = vmatprep.subr.bf16.mxu1 %v1447_v12 }
 0x121   :  { %1314 = vmatprep.mubr.msk.bf16.mxu1 %vm380_vm1, %v335_v4 }
 0x122   :  { %1315 = vmatmul.mubr.msk.bf16.gmra.mrb[12].mxu1 %vm380_vm1, %v336_v2 }
 0x123   :  { %1318 = vmatprep.mubr.msk.bf16.mxu1 %vm380_vm1, %v337_v48  ;;  %1355 = vmatpush3.bf16.msra.mxu1 %v1447_v12 }
 0x12a   :  { %1319 = vmatmul.mubr.msk.bf16.gmra.mrb[16].mxu1 %vm380_vm1, %v338_v45 }
 0x12b   :  { %1322 = vmatprep.mubr.msk.bf16.mxu1 %vm380_vm1, %v339_v7  ;;  %v1449_v7 = vld [vmem:[#allocation7] sm:$0xff]  }
 0x12c   :  { %1374 = vmatprep.subr.bf16.mxu0 %v1449_v7 }
 0x132   :  { %1323 = vmatmul.mubr.msk.bf16.gmra.mrb[20].mxu1 %vm380_vm1, %v340_v6  ;;  %v1448_v6 = vld [vmem:[%s1809_s7 + $0x18] sm:$0xff]  }
 0x133   :  { %1356 = vmatprep.subr.bf16.mxu1 %v1448_v6 }
 0x134   :  { %1357 = vmatpush3.bf16.msra.mxu1 %v1448_v6 }
 0x1ed   :  { %v1312_v14 = vpop.f32.mrb[8].mxu1 }
 0x1ee   :  { %v448_v15 = vadd.f32 %v1312_v14, %v1166_v13  ;;  %v439_v16 = vpop.f32.mrb[9].mxu1 }
 0x1ef   :  { %v440_v17 = vadd.f32 %v1166_v13, %v439_v16  ;;  %v1313_v18 = vpop.f32.mrb[10].mxu1 }
 0x1f0   :  { %v451_v19 = vadd.f32 %v1313_v18, %v1166_v13  ;;  %v442_v20 = vpop.f32.mrb[11].mxu1  ;;  %v504_v22 = vmax.f32 %v448_v15, 0.0 }
 0x1f1   :  { %v443_v21 = vadd.f32 %v1166_v13, %v442_v20  ;;  %v502_v24 = vmax.f32 %v440_v17, 0.0 }
 0x1f2   :  { %v505_v23 = vmax.f32 %v451_v19, 0.0 }
 0x1f3   :  { %v503_v25 = vmax.f32 %v443_v21, 0.0 }
 0x1f4   :  { %v519_v26 = vpack.c.bf16 %v505_v23, %v504_v22 }
 0x1f5   :  { %v518_v27 = vpack.c.bf16 %v503_v25, %v502_v24  ;;  %v1316_v28 = vpop.f32.mrb[12].mxu1 }
 0x1f6   :  { %v464_v29 = vadd.f32 %v1316_v28, %v1166_v13  ;;  %v455_v30 = vpop.f32.mrb[13].mxu1 }
 0x1f7   :  { %v456_v31 = vadd.f32 %v1166_v13, %v455_v30  ;;  %v1317_v32 = vpop.f32.mrb[14].mxu1  ;;  %1334 = vmatprep.mubr.msk.bf16.mxu0 %vm380_vm1, %v518_v27 }
 0x1f8   :  { %v467_v33 = vadd.f32 %v1317_v32, %v1166_v13  ;;  %v458_v34 = vpop.f32.mrb[15].mxu1  ;;  %1335 = vmatmul.mubr.msk.bf16.vlgmr.msra.gmra.mrb[8].mxu0 %vm380_vm1, %v519_v26  ;;  %v508_v36 = vmax.f32 %v464_v29, 0.0 }
 0x1f9   :  { %v459_v35 = vadd.f32 %v1166_v13, %v458_v34  ;;  %v506_v38 = vmax.f32 %v456_v31, 0.0  ;;  %1375 = vmatpush3.bf16.msra.mxu0 %v1449_v7 }
 0x1fa   :  { %v509_v37 = vmax.f32 %v467_v33, 0.0  ;;  %1376 = vmatprep.subr.bf16.mxu0 %v1450_v8 }
 0x1fb   :  { %v507_v39 = vmax.f32 %v459_v35, 0.0 }
 0x1fc   :  { %v521_v40 = vpack.c.bf16 %v509_v37, %v508_v36 }
 0x1fd   :  { %v520_v41 = vpack.c.bf16 %v507_v39, %v506_v38  ;;  %v1320_v42 = vpop.f32.mrb[16].mxu1  ;;  %1377 = vmatpush3.bf16.msra.mxu0 %v1450_v8 }
 0x1fe   :  { %v480_v43 = vadd.f32 %v1320_v42, %v1166_v13  ;;  %v471_v44 = vpop.f32.mrb[17].mxu1  ;;  %1378 = vmatprep.subr.bf16.mxu0 %v1451_v9 }
 0x1ff   :  { %v472_v45 = vadd.f32 %v1166_v13, %v471_v44  ;;  %v1321_v46 = vpop.f32.mrb[18].mxu1  ;;  %1338 = vmatprep.mubr.msk.bf16.mxu0 %vm380_vm1, %v520_v41 }
 0x200   :  { %v483_v47 = vadd.f32 %v1321_v46, %v1166_v13  ;;  %v474_v48 = vpop.f32.mrb[19].mxu1  ;;  %1339 = vmatmul.mubr.msk.bf16.gmra.mrb[12].mxu0 %vm380_vm1, %v521_v40  ;;  %v512_v50 = vmax.f32 %v480_v43, 0.0 }
 0x201   :  { %v475_v49 = vadd.f32 %v1166_v13, %v474_v48  ;;  %v510_v52 = vmax.f32 %v472_v45, 0.0  ;;  %1379 = vmatpush3.bf16.msra.mxu0 %v1451_v9 }
 0x202   :  { %v513_v51 = vmax.f32 %v483_v47, 0.0 }
 0x203   :  { %v511_v53 = vmax.f32 %v475_v49, 0.0 }
 0x204   :  { %v523_v54 = vpack.c.bf16 %v513_v51, %v512_v50 }
 0x205   :  { %v522_v55 = vpack.c.bf16 %v511_v53, %v510_v52  ;;  %v1324_v56 = vpop.f32.mrb[20].mxu1 }
 0x206   :  { %v496_v57 = vadd.f32 %v1324_v56, %v1166_v13  ;;  %v487_v58 = vpop.f32.mrb[21].mxu1 }
 0x207   :  { %v488_v59 = vadd.f32 %v1166_v13, %v487_v58  ;;  %v1325_v60 = vpop.f32.mrb[22].mxu1  ;;  %1342 = vmatprep.mubr.msk.bf16.mxu0 %vm380_vm1, %v522_v55 }
 0x208   :  { %v499_v61 = vadd.f32 %v1325_v60, %v1166_v13  ;;  %v490_v62 = vpop.f32.mrb[23].mxu1  ;;  %1343 = vmatmul.mubr.msk.bf16.gmra.mrb[16].mxu0 %vm380_vm1, %v523_v54  ;;  %v516_v0 = vmax.f32 %v496_v57, 0.0 }
 0x209   :  { %v491_v63 = vadd.f32 %v1166_v13, %v490_v62  ;;  %v514_v2 = vmax.f32 %v488_v59, 0.0 }
 0x20a   :  { %v517_v1 = vmax.f32 %v499_v61, 0.0 }
 0x20b   :  { %v515_v3 = vmax.f32 %v491_v63, 0.0 }
 0x20c   :  { %v525_v4 = vpack.c.bf16 %v517_v1, %v516_v0 }
 0x20d   :  { %v524_v5 = vpack.c.bf16 %v515_v3, %v514_v2  ;;  %v1452_v3 = vld [vmem:[#allocation7 + $0x18] sm:$0xff]  }
 0x20e   :  { %1380 = vmatprep.subr.bf16.mxu0 %v1452_v3 }
 0x20f   :  { %1346 = vmatprep.mubr.msk.bf16.mxu0 %vm380_vm1, %v524_v5  ;;  %1381 = vmatpush3.bf16.msra.mxu0 %v1452_v3 }
 0x210   :  { %1347 = vmatmul.mubr.msk.bf16.gmra.mrb[20].mxu0 %vm380_vm1, %v525_v4  ;;  %v1192_v4 = vld [vmem:[%s1810_s8] ss:$0 sm:$0xff] }
 0x2cb   :  { %v1336_v11 = vpop.f32.mrb[8].mxu0 }
 0x2cc   :  { %v632_v12 = vadd.f32 %v1336_v11, %v1179_v10  ;;  %v623_v13 = vpop.f32.mrb[9].mxu0 }
 0x2cd   :  { %v624_v14 = vadd.f32 %v1179_v10, %v623_v13  ;;  %v1337_v15 = vpop.f32.mrb[10].mxu0 }
 0x2ce   :  { %v635_v16 = vadd.f32 %v1337_v15, %v1179_v10  ;;  %v626_v17 = vpop.f32.mrb[11].mxu0  ;;  %v688_v19 = vmax.f32 %v632_v12, 0.0 }
 0x2cf   :  { %v627_v18 = vadd.f32 %v1179_v10, %v626_v17  ;;  %v686_v21 = vmax.f32 %v624_v14, 0.0 }
 0x2d0   :  { %v689_v20 = vmax.f32 %v635_v16, 0.0 }
 0x2d1   :  { %v687_v22 = vmax.f32 %v627_v18, 0.0 }
 0x2d2   :  { %v703_v23 = vpack.c.bf16 %v689_v20, %v688_v19 }
 0x2d3   :  { %v702_v24 = vpack.c.bf16 %v687_v22, %v686_v21  ;;  %v1340_v25 = vpop.f32.mrb[12].mxu0 }
 0x2d4   :  { %v648_v26 = vadd.f32 %v1340_v25, %v1179_v10  ;;  %v639_v27 = vpop.f32.mrb[13].mxu0 }
 0x2d5   :  { %v640_v28 = vadd.f32 %v1179_v10, %v639_v27  ;;  %v1341_v29 = vpop.f32.mrb[14].mxu0  ;;  %1358 = vmatprep.mubr.msk.bf16.mxu1 %vm380_vm1, %v702_v24 }
 0x2d6   :  { %v651_v30 = vadd.f32 %v1341_v29, %v1179_v10  ;;  %v642_v31 = vpop.f32.mrb[15].mxu0  ;;  %1359 = vmatmul.mubr.msk.bf16.vlgmr.msra.gmra.mrb[24].mxu1 %vm380_vm1, %v703_v23  ;;  %v692_v33 = vmax.f32 %v648_v26, 0.0 }
 0x2d7   :  { %v643_v32 = vadd.f32 %v1179_v10, %v642_v31  ;;  %v690_v35 = vmax.f32 %v640_v28, 0.0 }
 0x2d8   :  { %v693_v34 = vmax.f32 %v651_v30, 0.0 }
 0x2d9   :  { %v691_v36 = vmax.f32 %v643_v32, 0.0 }
 0x2da   :  { %v705_v37 = vpack.c.bf16 %v693_v34, %v692_v33 }
 0x2db   :  { %v704_v38 = vpack.c.bf16 %v691_v36, %v690_v35  ;;  %v1344_v39 = vpop.f32.mrb[16].mxu0 }
 0x2dc   :  { %v664_v40 = vadd.f32 %v1344_v39, %v1179_v10  ;;  %v655_v41 = vpop.f32.mrb[17].mxu0 }
 0x2dd   :  { %v656_v42 = vadd.f32 %v1179_v10, %v655_v41  ;;  %v1345_v43 = vpop.f32.mrb[18].mxu0  ;;  %1362 = vmatprep.mubr.msk.bf16.mxu1 %vm380_vm1, %v704_v38 }
 0x2de   :  { %v667_v44 = vadd.f32 %v1345_v43, %v1179_v10  ;;  %v658_v45 = vpop.f32.mrb[19].mxu0  ;;  %1363 = vmatmul.mubr.msk.bf16.gmra.mrb[28].mxu1 %vm380_vm1, %v705_v37  ;;  %v696_v47 = vmax.f32 %v664_v40, 0.0 }
 0x2df   :  { %v659_v46 = vadd.f32 %v1179_v10, %v658_v45  ;;  %v694_v49 = vmax.f32 %v656_v42, 0.0 }
 0x2e0   :  { %v697_v48 = vmax.f32 %v667_v44, 0.0 }
 0x2e1   :  { %v695_v50 = vmax.f32 %v659_v46, 0.0 }
 0x2e2   :  { %v707_v51 = vpack.c.bf16 %v697_v48, %v696_v47 }
 0x2e3   :  { %v706_v52 = vpack.c.bf16 %v695_v50, %v694_v49  ;;  %v1348_v53 = vpop.f32.mrb[20].mxu0 }
 0x2e4   :  { %v680_v54 = vadd.f32 %v1348_v53, %v1179_v10  ;;  %v671_v55 = vpop.f32.mrb[21].mxu0 }
 0x2e5   :  { %v672_v56 = vadd.f32 %v1179_v10, %v671_v55  ;;  %v1349_v57 = vpop.f32.mrb[22].mxu0  ;;  %1366 = vmatprep.mubr.msk.bf16.mxu1 %vm380_vm1, %v706_v52 }
 0x2e6   :  { %v683_v58 = vadd.f32 %v1349_v57, %v1179_v10  ;;  %v674_v59 = vpop.f32.mrb[23].mxu0  ;;  %1367 = vmatmul.mubr.msk.bf16.gmra.mrb[32].mxu1 %vm380_vm1, %v707_v51  ;;  %v700_v61 = vmax.f32 %v680_v54, 0.0 }
 0x2e7   :  { %v675_v60 = vadd.f32 %v1179_v10, %v674_v59  ;;  %v698_v63 = vmax.f32 %v672_v56, 0.0 }
 0x2e8   :  { %v701_v62 = vmax.f32 %v683_v58, 0.0 }
 0x2e9   :  { %v699_v0 = vmax.f32 %v675_v60, 0.0 }
 0x2ea   :  { %v709_v1 = vpack.c.bf16 %v701_v62, %v700_v61  ;;  %v1552_v61 = vmov 0.0   ;;  %v1205_v62 = vld [vmem:[%s1812_s10] ss:$0 sm:$0xff] }
 0x2eb   :  { %v708_v2 = vpack.c.bf16 %v699_v0, %v698_v63  ;;  %1398 = vmatprep.subr.bf16.mxu1 %v1552_v61  ;;  %123 = vst.msk [vmem:[#allocation8] sm:$0x3] %vm122_vm3, %v1552_v61 }
 0x2ed   :  { %1370 = vmatprep.mubr.msk.bf16.mxu1 %vm380_vm1, %v708_v2 }
 0x2ee   :  { %1371 = vmatmul.mubr.msk.bf16.gmra.mrb[36].mxu1 %vm380_vm1, %v709_v1 }
 0x2ef   :  { %1414 = vmatprep.mubr.msk.bf16.mxu1 %vm1553_vm2, %v1552_v61 }
 0x3a9   :  { %v1360_v5 = vpop.f32.mrb[24].mxu1 }
 0x3aa   :  { %v816_v6 = vadd.f32 %v1360_v5, %v1192_v4  ;;  %v807_v7 = vpop.f32.mrb[25].mxu1 }
 0x3ab   :  { %v808_v8 = vadd.f32 %v1192_v4, %v807_v7  ;;  %v1361_v9 = vpop.f32.mrb[26].mxu1 }
 0x3ac   :  { %v819_v10 = vadd.f32 %v1361_v9, %v1192_v4  ;;  %v810_v11 = vpop.f32.mrb[27].mxu1  ;;  %v872_v13 = vmax.f32 %v816_v6, 0.0 }
 0x3ad   :  { %v811_v12 = vadd.f32 %v1192_v4, %v810_v11  ;;  %v870_v15 = vmax.f32 %v808_v8, 0.0 }
 0x3ae   :  { %v873_v14 = vmax.f32 %v819_v10, 0.0 }
 0x3af   :  { %v871_v16 = vmax.f32 %v811_v12, 0.0 }
 0x3b0   :  { %v887_v17 = vpack.c.bf16 %v873_v14, %v872_v13 }
 0x3b1   :  { %v886_v18 = vpack.c.bf16 %v871_v16, %v870_v15  ;;  %v1364_v19 = vpop.f32.mrb[28].mxu1 }
 0x3b2   :  { %v832_v20 = vadd.f32 %v1364_v19, %v1192_v4  ;;  %v823_v21 = vpop.f32.mrb[29].mxu1 }
 0x3b3   :  { %v824_v22 = vadd.f32 %v1192_v4, %v823_v21  ;;  %v1365_v23 = vpop.f32.mrb[30].mxu1  ;;  %1382 = vmatprep.mubr.msk.bf16.mxu0 %vm380_vm1, %v886_v18 }
 0x3b4   :  { %v835_v24 = vadd.f32 %v1365_v23, %v1192_v4  ;;  %v826_v25 = vpop.f32.mrb[31].mxu1  ;;  %1383 = vmatmul.mubr.msk.bf16.vlgmr.msra.gmra.mrb[24].mxu0 %vm380_vm1, %v887_v17  ;;  %v876_v27 = vmax.f32 %v832_v20, 0.0 }
 0x3b5   :  { %v827_v26 = vadd.f32 %v1192_v4, %v826_v25  ;;  %v874_v29 = vmax.f32 %v824_v22, 0.0 }
 0x3b6   :  { %v877_v28 = vmax.f32 %v835_v24, 0.0 }
 0x3b7   :  { %v875_v30 = vmax.f32 %v827_v26, 0.0 }
 0x3b8   :  { %v889_v31 = vpack.c.bf16 %v877_v28, %v876_v27 }
 0x3b9   :  { %v888_v32 = vpack.c.bf16 %v875_v30, %v874_v29  ;;  %v1368_v33 = vpop.f32.mrb[32].mxu1 }
 0x3ba   :  { %v848_v34 = vadd.f32 %v1368_v33, %v1192_v4  ;;  %v839_v35 = vpop.f32.mrb[33].mxu1 }
 0x3bb   :  { %v840_v36 = vadd.f32 %v1192_v4, %v839_v35  ;;  %v1369_v37 = vpop.f32.mrb[34].mxu1  ;;  %1386 = vmatprep.mubr.msk.bf16.mxu0 %vm380_vm1, %v888_v32 }
 0x3bc   :  { %v851_v38 = vadd.f32 %v1369_v37, %v1192_v4  ;;  %v842_v39 = vpop.f32.mrb[35].mxu1  ;;  %1387 = vmatmul.mubr.msk.bf16.gmra.mrb[28].mxu0 %vm380_vm1, %v889_v31  ;;  %v880_v41 = vmax.f32 %v848_v34, 0.0 }
 0x3bd   :  { %v843_v40 = vadd.f32 %v1192_v4, %v842_v39  ;;  %v878_v43 = vmax.f32 %v840_v36, 0.0 }
 0x3be   :  { %v881_v42 = vmax.f32 %v851_v38, 0.0 }
 0x3bf   :  { %v879_v44 = vmax.f32 %v843_v40, 0.0 }
 0x3c0   :  { %v891_v45 = vpack.c.bf16 %v881_v42, %v880_v41 }
 0x3c1   :  { %v890_v46 = vpack.c.bf16 %v879_v44, %v878_v43  ;;  %v1372_v47 = vpop.f32.mrb[36].mxu1 }
 0x3c2   :  { %v864_v48 = vadd.f32 %v1372_v47, %v1192_v4  ;;  %v855_v49 = vpop.f32.mrb[37].mxu1 }
 0x3c3   :  { %v856_v50 = vadd.f32 %v1192_v4, %v855_v49  ;;  %v1373_v51 = vpop.f32.mrb[38].mxu1  ;;  %1390 = vmatprep.mubr.msk.bf16.mxu0 %vm380_vm1, %v890_v46 }
 0x3c4   :  { %v867_v52 = vadd.f32 %v1373_v51, %v1192_v4  ;;  %v858_v53 = vpop.f32.mrb[39].mxu1  ;;  %1391 = vmatmul.mubr.msk.bf16.gmra.mrb[32].mxu0 %vm380_vm1, %v891_v45  ;;  %v884_v55 = vmax.f32 %v864_v48, 0.0 }
 0x3c5   :  { %v859_v54 = vadd.f32 %v1192_v4, %v858_v53  ;;  %v882_v57 = vmax.f32 %v856_v50, 0.0 }
 0x3c6   :  { %v885_v56 = vmax.f32 %v867_v52, 0.0 }
 0x3c7   :  { %v883_v58 = vmax.f32 %v859_v54, 0.0 }
 0x3c8   :  { %v893_v59 = vpack.c.bf16 %v885_v56, %v884_v55  ;;  %v1079_v55 = vld [vmem:[%s1813_s11] sm:$0x1]  ;;  %v1078_v56 = vld [vmem:[#allocation8] sm:$0x3] }
 0x3c9   :  { %v892_v60 = vpack.c.bf16 %v883_v58, %v882_v57 }
 0x3cb   :  { %1394 = vmatprep.mubr.msk.bf16.mxu0 %vm380_vm1, %v892_v60 }
 0x3cc   :  { %1395 = vmatmul.mubr.msk.bf16.gmra.mrb[36].mxu0 %vm380_vm1, %v893_v59 }
 0x487   :  { %v1384_v63 = vpop.f32.mrb[24].mxu0 }
 0x488   :  { %v1000_v0 = vadd.f32 %v1384_v63, %v1205_v62  ;;  %v991_v1 = vpop.f32.mrb[25].mxu0 }
 0x489   :  { %v992_v2 = vadd.f32 %v1205_v62, %v991_v1  ;;  %v1385_v3 = vpop.f32.mrb[26].mxu0 }
 0x48a   :  { %v1003_v4 = vadd.f32 %v1385_v3, %v1205_v62  ;;  %v994_v5 = vpop.f32.mrb[27].mxu0  ;;  %v1056_v7 = vmax.f32 %v1000_v0, 0.0 }
 0x48b   :  { %v995_v6 = vadd.f32 %v1205_v62, %v994_v5  ;;  %v1054_v9 = vmax.f32 %v992_v2, 0.0 }
 0x48c   :  { %v1057_v8 = vmax.f32 %v1003_v4, 0.0 }
 0x48d   :  { %v1055_v10 = vmax.f32 %v995_v6, 0.0 }
 0x48e   :  { %v1071_v11 = vpack.c.bf16 %v1057_v8, %v1056_v7 }
 0x48f   :  { %v1070_v12 = vpack.c.bf16 %v1055_v10, %v1054_v9  ;;  %v1388_v13 = vpop.f32.mrb[28].mxu0 }
 0x490   :  { %v1016_v14 = vadd.f32 %v1388_v13, %v1205_v62  ;;  %v1007_v15 = vpop.f32.mrb[29].mxu0 }
 0x491   :  { %v1008_v16 = vadd.f32 %v1205_v62, %v1007_v15  ;;  %v1389_v17 = vpop.f32.mrb[30].mxu0  ;;  %1399 = vmatpush3.bf16.msra.mxu1 %v1070_v12 }
 0x492   :  { %v1019_v18 = vadd.f32 %v1389_v17, %v1205_v62  ;;  %v1010_v19 = vpop.f32.mrb[31].mxu0  ;;  %1400 = vmatprep.subr.bf16.mxu1 %v1552_v61  ;;  %v1060_v21 = vmax.f32 %v1016_v14, 0.0 }
 0x493   :  { %v1011_v20 = vadd.f32 %v1205_v62, %v1010_v19  ;;  %v1058_v23 = vmax.f32 %v1008_v16, 0.0 }
 0x494   :  { %v1061_v22 = vmax.f32 %v1019_v18, 0.0 }
 0x495   :  { %v1059_v24 = vmax.f32 %v1011_v20, 0.0  ;;  %1401 = vmatpush3.bf16.msra.mxu1 %v1071_v11 }
 0x496   :  { %v1073_v25 = vpack.c.bf16 %v1061_v22, %v1060_v21  ;;  %1402 = vmatprep.subr.bf16.mxu1 %v1552_v61 }
 0x497   :  { %v1072_v26 = vpack.c.bf16 %v1059_v24, %v1058_v23  ;;  %v1392_v27 = vpop.f32.mrb[32].mxu0 }
 0x498   :  { %v1032_v28 = vadd.f32 %v1392_v27, %v1205_v62  ;;  %v1023_v29 = vpop.f32.mrb[33].mxu0 }
 0x499   :  { %v1024_v30 = vadd.f32 %v1205_v62, %v1023_v29  ;;  %v1393_v31 = vpop.f32.mrb[34].mxu0  ;;  %1403 = vmatpush3.bf16.msra.mxu1 %v1072_v26 }
 0x49a   :  { %v1035_v32 = vadd.f32 %v1393_v31, %v1205_v62  ;;  %v1026_v33 = vpop.f32.mrb[35].mxu0  ;;  %1404 = vmatprep.subr.bf16.mxu1 %v1552_v61  ;;  %v1064_v35 = vmax.f32 %v1032_v28, 0.0 }
 0x49b   :  { %v1027_v34 = vadd.f32 %v1205_v62, %v1026_v33  ;;  %v1062_v37 = vmax.f32 %v1024_v30, 0.0 }
 0x49c   :  { %v1065_v36 = vmax.f32 %v1035_v32, 0.0 }
 0x49d   :  { %v1063_v38 = vmax.f32 %v1027_v34, 0.0  ;;  %1405 = vmatpush3.bf16.msra.mxu1 %v1073_v25 }
 0x49e   :  { %v1075_v39 = vpack.c.bf16 %v1065_v36, %v1064_v35  ;;  %1406 = vmatprep.subr.bf16.mxu1 %v1552_v61 }
 0x49f   :  { %v1074_v40 = vpack.c.bf16 %v1063_v38, %v1062_v37  ;;  %v1396_v41 = vpop.f32.mrb[36].mxu0 }
 0x4a0   :  { %v1048_v42 = vadd.f32 %v1396_v41, %v1205_v62  ;;  %v1039_v43 = vpop.f32.mrb[37].mxu0 }
 0x4a1   :  { %v1040_v44 = vadd.f32 %v1205_v62, %v1039_v43  ;;  %v1397_v45 = vpop.f32.mrb[38].mxu0  ;;  %1407 = vmatpush3.bf16.msra.mxu1 %v1074_v40 }
 0x4a2   :  { %v1051_v46 = vadd.f32 %v1397_v45, %v1205_v62  ;;  %v1042_v47 = vpop.f32.mrb[39].mxu0  ;;  %1408 = vmatprep.subr.bf16.mxu1 %v1552_v61  ;;  %v1068_v49 = vmax.f32 %v1048_v42, 0.0 }
 0x4a3   :  { %v1043_v48 = vadd.f32 %v1205_v62, %v1042_v47  ;;  %v1066_v51 = vmax.f32 %v1040_v44, 0.0 }
 0x4a4   :  { %v1069_v50 = vmax.f32 %v1051_v46, 0.0 }
 0x4a5   :  { %v1067_v52 = vmax.f32 %v1043_v48, 0.0  ;;  %1409 = vmatpush3.bf16.msra.mxu1 %v1075_v39 }
 0x4a6   :  { %v1077_v53 = vpack.c.bf16 %v1069_v50, %v1068_v49  ;;  %1410 = vmatprep.subr.bf16.mxu1 %v1552_v61 }
 0x4a7   :  { %v1076_v54 = vpack.c.bf16 %v1067_v52, %v1066_v51 }
 0x4a9   :  { %1411 = vmatpush3.bf16.msra.mxu1 %v1076_v54 }
 0x4aa   :  { %1412 = vmatprep.subr.bf16.mxu1 %v1552_v61 }
 0x4ad   :  { %1413 = vmatpush3.bf16.msra.mxu1 %v1077_v53 }
 0x4b0   :  { %1415 = vmatmul.mubr.bf16.vlgmr.msra.gmra.mrb[40].mxu1 %v1079_v55 }
 0x583   :  { %v1114_v57 = vpop.f32.mrb[40].mxu1 }
 0x584   :  { %v1120_v58 = vadd.f32 %v1114_v57, %v1078_v56  ;;  %v1416_v59 = vpop.f32.mrb[41].mxu1 }
 0x585   :  { %v1117_v60 = vpop.f32.mrb[42].mxu1 }
 0x586   :  { %1122 = vst.msk [vmem:[#allocation8] sm:$0x3] %vm122_vm3, %v1120_v58  ;;  %v1417_v62 = vpop.f32.mrb[43].mxu1 }
 0x587   :  { %1530 = shalt.err (!%p1527_p0)
}
 0x588   :  { %s1531_s27 = scalar_lea.hbm %s1814_s12, 32 }
 0x589   :  { %p1532_p1 = scmp.ne.s32.totalorder %s1814_s12, %s1531_s27  ;;  %p1535_p2 = scmp.lt.u32.totalorder %s1531_s27, %s1814_s12 }
 0x58b   :  { %p1537_p3 = pnand %p1535_p2, %p1532_p1 }
 0x58d   :  { %1540 = shalt.err (!%p1537_p3)
}
 0x58e   :  { %1132 = dma.vmem_to_hbm [thread:$0]  %s1130_s25, 32, %s1814_s12, [#allocation4]  }
 0x58f   :  { %1545 = dma.done.wait [#allocation4], 32  }
 0x590   :  { %1546 = vsyncadd [#allocation4], 4294967264 }
 0x591   :  { %1136 = vsyncpa [#allocation3], 1 }
 0x592   :  { %1137 = vsyncpa [#allocation6], 1 }
 0x593   :  { %1138 = vsyncpa [#allocation4], 1 }

</bundles_post_ra>
